<compile_context>
chip_gen: v5e
topology: v5e:2x2
jax: 0.10.0
libtpu: 0.0.40
codegen_flags: <defaults>
</compile_context>

<pallas_src>
import jax
import jax.numpy as jnp
import numpy as np
from jax.experimental import pallas as pl
from jax.experimental.pallas import tpu as pltpu


def _link_pred_kernel(src_ref, dst_ref, wsrc_ref, wdst_ref, bias_ref,
                      wout_ref, bout_ref, o_ref):
    # src_ref / dst_ref : [TE, D]   gathered edge-endpoint embeddings
    # wsrc_ref/wdst_ref : [D, D]    Linear weights, stored [in, out]
    # bias_ref          : [1, D]    b_src + b_dst (folded)
    # wout_ref          : [D, 1]    out_fc weight, stored [in, out]
    # bout_ref          : [1, 1]    out_fc bias
    # o_ref             : [TE, 1]   per-edge score
    src_h = jnp.dot(src_ref[...], wsrc_ref[...],
                    preferred_element_type=jnp.float32)
    dst_h = jnp.dot(dst_ref[...], wdst_ref[...],
                    preferred_element_type=jnp.float32)
    h = jnp.maximum(src_h + dst_h + bias_ref[...], 0.0)          # relu
    score = jnp.dot(h, wout_ref[...],
                    preferred_element_type=jnp.float32) + bout_ref[...]
    o_ref[...] = score.astype(o_ref.dtype)


def _edge_scores(src_emb, dst_emb, wsrc, wdst, bias, wout, bout,
                 *, block_rows=1024):
    """src_emb, dst_emb: [E, D] f32  ->  scores [E, 1] f32."""
    E, D = src_emb.shape
    assert block_rows % 8 == 0

    # Pad edge count to a tile multiple instead of asserting divisibility.
    e8 = ((E + 7) // 8) * 8
    block = min(block_rows, e8)
    e_pad = ((E + block - 1) // block) * block
    if e_pad != E:
        pad = e_pad - E
        src_emb = jnp.pad(src_emb, ((0, pad), (0, 0)))
        dst_emb = jnp.pad(dst_emb, ((0, pad), (0, 0)))

    grid = e_pad // block

    out = pl.pallas_call(
        _link_pred_kernel,
        out_shape=jax.ShapeDtypeStruct((e_pad, 1), jnp.float32),
        grid_spec=pltpu.PrefetchScalarGridSpec(
            num_scalar_prefetch=0,
            grid=(grid,),
            in_specs=[
                pl.BlockSpec((block, D), lambda i: (i, 0)),   # src embeddings
                pl.BlockSpec((block, D), lambda i: (i, 0)),   # dst embeddings
                pl.BlockSpec((D, D), lambda i: (0, 0)),       # W_src (replicated)
                pl.BlockSpec((D, D), lambda i: (0, 0)),       # W_dst
                pl.BlockSpec((1, D), lambda i: (0, 0)),       # b_src + b_dst
                pl.BlockSpec((D, 1), lambda i: (0, 0)),       # W_out
                pl.BlockSpec((1, 1), lambda i: (0, 0)),       # b_out
            ],
            out_specs=pl.BlockSpec((block, 1), lambda i: (i, 0)),
        ),
        compiler_params=pltpu.CompilerParams(
            dimension_semantics=("parallel",)),
    )(src_emb, dst_emb, wsrc, wdst, bias, wout, bout)

    return out[:E]


def msg_link_predictor(x, pos_edges, neg_edges, params, *, block_rows=1024):
    """x: [N, D] node embeddings.
    pos_edges / neg_edges: (src_ids, dst_ids) int32 arrays of shape [E].
    params: (w_src, b_src, w_dst, b_dst, w_out, b_out) with weights in
            [in, out] layout (i.e. already transposed vs. torch nn.Linear).
    Returns (pos_scores [E_pos, 1], neg_scores [E_neg, 1])."""
    w_src, b_src, w_dst, b_dst, w_out, b_out = params
    D = x.shape[-1]
    x = x.astype(jnp.float32)

    bias = (b_src + b_dst).reshape(1, D).astype(jnp.float32)
    w_src = w_src.astype(jnp.float32)
    w_dst = w_dst.astype(jnp.float32)
    w_out = w_out.reshape(D, 1).astype(jnp.float32)
    b_out = b_out.reshape(1, 1).astype(jnp.float32)

    def one_graph(edges):
        src_ids, dst_ids = edges
        # edge-endpoint gather (DGL apply_edges) — plain XLA gather glue
        src_emb = jnp.take(x, src_ids, axis=0)
        dst_emb = jnp.take(x, dst_ids, axis=0)
        return _edge_scores(src_emb, dst_emb, w_src, w_dst, bias,
                            w_out, b_out, block_rows=block_rows)

    return one_graph(pos_edges), one_graph(neg_edges)


def make_params(emb_dim, key):
    """Random deterministic parameters matching MsgLinkPredictor.__init__.

    Weights are returned in [in, out] layout so the kernel computes x @ W + b,
    which equals torch's x @ W_torch.T + b."""
    k1, k2, k3, k4, k5, k6 = jax.random.split(key, 6)
    scale = 1.0 / np.sqrt(emb_dim)
    w_src = jax.random.uniform(k1, (emb_dim, emb_dim), jnp.float32, -scale, scale)
    b_src = jax.random.uniform(k2, (emb_dim,), jnp.float32, -scale, scale)
    w_dst = jax.random.uniform(k3, (emb_dim, emb_dim), jnp.float32, -scale, scale)
    b_dst = jax.random.uniform(k4, (emb_dim,), jnp.float32, -scale, scale)
    w_out = jax.random.uniform(k5, (emb_dim, 1), jnp.float32, -scale, scale)
    b_out = jax.random.uniform(k6, (1,), jnp.float32, -scale, scale)
    return (w_src, b_src, w_dst, b_dst, w_out, b_out)


def _reference(x, edges, params):
    w_src, b_src, w_dst, b_dst, w_out, b_out = params
    src_ids, dst_ids = edges
    s = x[src_ids] @ w_src + b_src
    d = x[dst_ids] @ w_dst + b_dst
    h = jnp.maximum(s + d, 0.0)
    return h @ w_out + b_out


if __name__ == "__main__":
    EMB_DIM = 32
    NUM_NODES = 8

    key = jax.random.PRNGKey(0)
    k_x, k_p = jax.random.split(key)

    x = jax.random.normal(k_x, (NUM_NODES, EMB_DIM), dtype=jnp.float32)
    params = make_params(EMB_DIM, k_p)

    # Edge lists in the spirit of the docstring example (5 edges each).
    pos_edges = (jnp.array([0, 1, 2, 3, 4], jnp.int32),
                 jnp.array([1, 2, 3, 4, 0], jnp.int32))
    neg_edges = (jnp.array([0, 1, 2, 3, 4], jnp.int32),
                 jnp.array([2, 1, 4, 3, 0], jnp.int32))

    pos_score, neg_score = msg_link_predictor(x, pos_edges, neg_edges, params)
    pos_score = jax.block_until_ready(pos_score)
    neg_score = jax.block_until_ready(neg_score)

    pos_ref = _reference(x, pos_edges, params)
    neg_ref = _reference(x, neg_edges, params)

    np.testing.assert_allclose(np.asarray(pos_score), np.asarray(pos_ref),
                               rtol=1e-5, atol=1e-5)
    np.testing.assert_allclose(np.asarray(neg_score), np.asarray(neg_ref),
                               rtol=1e-5, atol=1e-5)

    print("KERNEL_OK")
</pallas_src>

<mosaic_0001>
module attributes {stable_mosaic.version = 11 : i64} {
  func.func @_link_pred_kernel(%arg0: i32, %arg1: memref<8x32xf32, #tpu.memory_space<vmem>>, %arg2: memref<8x32xf32, #tpu.memory_space<vmem>>, %arg3: memref<32x32xf32, #tpu.memory_space<vmem>>, %arg4: memref<32x32xf32, #tpu.memory_space<vmem>>, %arg5: memref<1x32xf32, #tpu.memory_space<vmem>>, %arg6: memref<32x1xf32, #tpu.memory_space<vmem>>, %arg7: memref<1x1xf32, #tpu.memory_space<vmem>>, %arg8: memref<8x1xf32, #tpu.memory_space<vmem>>) attributes {dimension_semantics = [#tpu.dimension_semantics<parallel>], iteration_bounds = array<i64: 1>, scalar_prefetch = 0 : i64, scratch_operands = 0 : i64, tpu.core_type = #tpu.core_type<tc>, window_params = [{transform_indices = @transform_0, window_bounds = array<i64: 8, 32>}, {transform_indices = @transform_1, window_bounds = array<i64: 8, 32>}, {pipeline_mode = #tpu.pipeline_mode<synchronous>, transform_indices = @transform_2, window_bounds = array<i64: 32, 32>}, {pipeline_mode = #tpu.pipeline_mode<synchronous>, transform_indices = @transform_3, window_bounds = array<i64: 32, 32>}, {pipeline_mode = #tpu.pipeline_mode<synchronous>, transform_indices = @transform_4, window_bounds = array<i64: 1, 32>}, {pipeline_mode = #tpu.pipeline_mode<synchronous>, transform_indices = @transform_5, window_bounds = array<i64: 32, 1>}, {pipeline_mode = #tpu.pipeline_mode<synchronous>, transform_indices = @transform_6, window_bounds = array<i64: 1, 1>}, {transform_indices = @transform_7, window_bounds = array<i64: 8, 1>}]} {
    %c0 = arith.constant 0 : index
    %c0_0 = arith.constant 0 : index
    %0 = vector.load %arg1[%c0, %c0_0] : memref<8x32xf32, #tpu.memory_space<vmem>>, vector<8x32xf32>
    %c0_1 = arith.constant 0 : index
    %c0_2 = arith.constant 0 : index
    %1 = vector.load %arg3[%c0_1, %c0_2] : memref<32x32xf32, #tpu.memory_space<vmem>>, vector<32x32xf32>
    %cst = arith.constant dense<0.000000e+00> : vector<8x32xf32>
    %2 = tpu.matmul %0, %1, %cst {dimension_numbers = #tpu.dot_dimension_numbers<[1], [0], [0], [1], [0, 0, 1, 1], [], []>} : vector<8x32xf32>, vector<32x32xf32>, vector<8x32xf32> -> vector<8x32xf32>
    %c0_3 = arith.constant 0 : index
    %c0_4 = arith.constant 0 : index
    %3 = vector.load %arg2[%c0_3, %c0_4] : memref<8x32xf32, #tpu.memory_space<vmem>>, vector<8x32xf32>
    %c0_5 = arith.constant 0 : index
    %c0_6 = arith.constant 0 : index
    %4 = vector.load %arg4[%c0_5, %c0_6] : memref<32x32xf32, #tpu.memory_space<vmem>>, vector<32x32xf32>
    %cst_7 = arith.constant dense<0.000000e+00> : vector<8x32xf32>
    %5 = tpu.matmul %3, %4, %cst_7 {dimension_numbers = #tpu.dot_dimension_numbers<[1], [0], [0], [1], [0, 0, 1, 1], [], []>} : vector<8x32xf32>, vector<32x32xf32>, vector<8x32xf32> -> vector<8x32xf32>
    %6 = arith.addf %2, %5 : vector<8x32xf32>
    %c0_8 = arith.constant 0 : index
    %c0_9 = arith.constant 0 : index
    %7 = vector.load %arg5[%c0_8, %c0_9] : memref<1x32xf32, #tpu.memory_space<vmem>>, vector<1x32xf32>
    %8 = vector.broadcast %7 : vector<1x32xf32> to vector<8x32xf32>
    %9 = arith.addf %6, %8 : vector<8x32xf32>
    %cst_10 = arith.constant 0.000000e+00 : f32
    %10 = vector.broadcast %cst_10 : f32 to vector<8x32xf32>
    %11 = arith.maximumf %9, %10 : vector<8x32xf32>
    %c0_11 = arith.constant 0 : index
    %c0_12 = arith.constant 0 : index
    %12 = vector.load %arg6[%c0_11, %c0_12] : memref<32x1xf32, #tpu.memory_space<vmem>>, vector<32x1xf32>
    %cst_13 = arith.constant dense<0.000000e+00> : vector<8x1xf32>
    %13 = tpu.matmul %11, %12, %cst_13 {dimension_numbers = #tpu.dot_dimension_numbers<[1], [0], [0], [1], [0, 0, 1, 1], [], []>} : vector<8x32xf32>, vector<32x1xf32>, vector<8x1xf32> -> vector<8x1xf32>
    %c0_14 = arith.constant 0 : index
    %c0_15 = arith.constant 0 : index
    %14 = vector.load %arg7[%c0_14, %c0_15] : memref<1x1xf32, #tpu.memory_space<vmem>>, vector<1x1xf32>
    %15 = vector.broadcast %14 : vector<1x1xf32> to vector<8x1xf32>
    %16 = arith.addf %13, %15 : vector<8x1xf32>
    %c0_16 = arith.constant 0 : index
    %c0_17 = arith.constant 0 : index
    %17 = vector.load %arg8[%c0_16, %c0_17] : memref<8x1xf32, #tpu.memory_space<vmem>>, vector<8x1xf32>
    tpu.vector_store %arg8[%c0_16, %c0_17], %16 {strides = array<i32>} : memref<8x1xf32, #tpu.memory_space<vmem>>, vector<8x1xf32>,
    return
  }
  func.func @transform_0(%arg0: i32) -> (i32, i32) {
    %c0_i32 = arith.constant 0 : i32
    %c0_i32_0 = arith.constant 0 : i32
    return %arg0, %c0_i32 : i32, i32
  }
  func.func @transform_1(%arg0: i32) -> (i32, i32) {
    %c0_i32 = arith.constant 0 : i32
    %c0_i32_0 = arith.constant 0 : i32
    return %arg0, %c0_i32 : i32, i32
  }
  func.func @transform_2(%arg0: i32) -> (i32, i32) {
    %c0_i32 = arith.constant 0 : i32
    %c0_i32_0 = arith.constant 0 : i32
    %c0_i32_1 = arith.constant 0 : i32
    return %c0_i32, %c0_i32_0 : i32, i32
  }
  func.func @transform_3(%arg0: i32) -> (i32, i32) {
    %c0_i32 = arith.constant 0 : i32
    %c0_i32_0 = arith.constant 0 : i32
    %c0_i32_1 = arith.constant 0 : i32
    return %c0_i32, %c0_i32_0 : i32, i32
  }
  func.func @transform_4(%arg0: i32) -> (i32, i32) {
    %c0_i32 = arith.constant 0 : i32
    %c0_i32_0 = arith.constant 0 : i32
    %c0_i32_1 = arith.constant 0 : i32
    return %c0_i32, %c0_i32_0 : i32, i32
  }
  func.func @transform_5(%arg0: i32) -> (i32, i32) {
    %c0_i32 = arith.constant 0 : i32
    %c0_i32_0 = arith.constant 0 : i32
    %c0_i32_1 = arith.constant 0 : i32
    return %c0_i32, %c0_i32_0 : i32, i32
  }
  func.func @transform_6(%arg0: i32) -> (i32, i32) {
    %c0_i32 = arith.constant 0 : i32
    %c0_i32_0 = arith.constant 0 : i32
    %c0_i32_1 = arith.constant 0 : i32
    return %c0_i32, %c0_i32_0 : i32, i32
  }
  func.func @transform_7(%arg0: i32) -> (i32, i32) {
    %c0_i32 = arith.constant 0 : i32
    %c0_i32_0 = arith.constant 0 : i32
    return %arg0, %c0_i32 : i32, i32
  }
}

</mosaic_0001>

<bundles_post_ra>
// kernel: tpu_custom_call.1
= control target key start
LH: loop header
LB: loop body
LE: loop exit
PB: predicated region body
PF: predicated region fallthrough
CT: control target
= control target key end

     0   :  { %s349_s0 = inlined_call_operand.hbm [shape: f32[8,32], index: 0, kind: input, shape index: {}]   ;;  %s350_s1 = inlined_call_operand.hbm [shape: f32[8,32], index: 1, kind: input, shape index: {}]   ;;  %s351_s2 = inlined_call_operand.vmem [shape: f32[32,32], index: 2, kind: input, shape index: {}]   ;;  %s352_s3 = inlined_call_operand.hbm [shape: f32[32,32], index: 3, kind: input, shape index: {}]   ;;  %s353_s4 = inlined_call_operand.vmem [shape: f32[1,32], index: 4, kind: input, shape index: {}]   ;;  %s354_s5 = inlined_call_operand.vmem [shape: f32[32,1], index: 5, kind: input, shape index: {}]   ;;  %s355_s6 = inlined_call_operand.<no memory space> [shape: f32[1,1], index: 6, kind: input, shape index: {}]   ;;  %s356_s7 = inlined_call_operand.vmem [shape: f32[8,1], index: 7, kind: output, shape index: {}]  }
   0x1   :  { %v12_v0 = vstv %s355_s6 }
   0x2   :  { %13 = vst [vmem:[#allocation2] sm:$0x1] %v12_v0 }
   0x3   :  { %14 = vsyncpa [#allocation4], 0 }
   0x4   :  { %15 = vsyncpa [#allocation6], 0  ;;  %s32_s28 = sshll.u32 %s350_s1, 4  ;;  %s259_s29 = smov [#allocation5]   ;;  %s33_s28 = int_to_ptr.hbm [resolvable:$true] %s32_s28 }
   0x5   :  { %s34_s30 = sshll.u32 %s259_s29, 4  ;;  %s21_s10 = sshll.u32 %s349_s0, 4  ;;  %s35_s30 = int_to_ptr.vmem [resolvable:$true] %s34_s30  ;;  %s22_s10 = int_to_ptr.hbm [resolvable:$true] %s21_s10 }
   0x6   :  { %37 = dma.hbm_to_vmem [thread:$0]  %s33_s28, 128, %s35_s30, [#allocation6]  }
   0x7   :  { %s260_s11 = smov [#allocation3]   ;;  %s44_s14 = sshll.u32 %s352_s3, 4  ;;  %s45_s14 = int_to_ptr.hbm [resolvable:$true] %s44_s14 }
   0x8   :  { %s23_s12 = sshll.u32 %s260_s11, 4  ;;  %s261_s1 = smov [#allocation7]   ;;  %s24_s12 = int_to_ptr.vmem [resolvable:$true] %s23_s12 }
   0x9   :  { %26 = dma.hbm_to_vmem [thread:$0]  %s22_s10, 128, %s24_s12, [#allocation4]  }
   0xa   :  { %s46_s15 = sshll.u32 %s261_s1, 4  ;;  %s262_s16 = smov 128   ;;  %s47_s15 = int_to_ptr.vmem [resolvable:$true] %s46_s15 }
   0xb   :  { %s263_s17 = smov 8  }
   0xc   :  { %52 = dma.hbm_to_vmem [thread:$0]  %s45_s14, 512, %s47_s15, [#allocation6], %s262_s16, %s262_s16, %s263_s17  }
   0xd   :  { %255 = dma.done.wait [#allocation4], 128  }
   0xe   :  { %256 = vsyncadd [#allocation4], 4294967168 }
   0xf   :  { %257 = dma.done.wait [#allocation6], 640  }
  0x10   :  { %258 = vsyncadd [#allocation6], 4294966656  ;;  %v80_v1 = vld [vmem:[#allocation7 + $0x18] sm:$0xff]  ;;  %v75_v2 = vld [vmem:[%s351_s2 + $0x18] sm:$0xff]  ;;  %vm81_vm0 = vcmask 261120   ;;  %vm165_vm1 = vcmask 7168  }
  0x11   :  { %v79_v3 = vld [vmem:[#allocation7 + $0x10] sm:$0xff]  ;;  %97 = vmatpush.msra.mxu0 %v80_v1  ;;  %120 = vmatpush.msra.mxu1 %v75_v2  ;;  %v74_v4 = vld [vmem:[%s351_s2 + $0x10] sm:$0xff]  ;;  %v78_v5 = vld [vmem:[#allocation7 + $0x8] sm:$0xff] }
  0x12   :  { %v73_v6 = vld [vmem:[%s351_s2 + $0x8] sm:$0xff]  ;;  %v77_v7 = vld [vmem:[#allocation7] sm:$0xff]  ;;  %v72_v8 = vld [vmem:[%s351_s2] sm:$0xff] }
  0x13   :  { %98 = vmatpush.msra.mxu0 %v79_v3  ;;  %121 = vmatpush.msra.mxu1 %v74_v4  ;;  %v76_v9 = vld [vmem:[#allocation5] sm:$0xff]  ;;  %v71_v10 = vld [vmem:[#allocation3] sm:$0xff]  ;;  %v137_v11 = vld [vmem:[%s354_s5 + $0x18] sm:$0xff] }
  0x14   :  { %157 = vmatpush.msra.mxu2 %v137_v11  ;;  %v136_v12 = vld [vmem:[%s354_s5 + $0x10] sm:$0xff]  ;;  %v135_v13 = vld [vmem:[%s354_s5 + $0x8] sm:$0xff]  ;;  %v134_v14 = vld [vmem:[%s354_s5] sm:$0xff] }
  0x15   :  { %99 = vmatpush.msra.mxu0 %v78_v5  ;;  %122 = vmatpush.msra.mxu1 %v73_v6  ;;  %v181_v15 = vld [vmem:[%s353_s4] ss:$0 sm:$0xff] }
  0x16   :  { %158 = vmatpush.msra.mxu2 %v136_v12  ;;  %v182_v21 = vld [vmem:[#allocation2] ss:$0 sm:$0xff] }
  0x17   :  { %100 = vmatpush.msra.mxu0 %v77_v7  ;;  %123 = vmatpush.msra.mxu1 %v72_v8 }
  0x18   :  { %173 = vmatmul.msk.f32.vlgmr.msra.gmra.mxu0 %vm81_vm0, %v76_v9  ;;  %174 = vmatmul.msk.f32.vlgmr.msra.gmra.mxu1 %vm81_vm0, %v71_v10 }
  0x19   :  { %159 = vmatpush.msra.mxu2 %v135_v13 }
  0x1b   :  { %160 = vmatpush.msra.mxu2 %v134_v14 }
  0x95   :  { %v102_v16 = vpop.f32.mrf.mxu0  ;;  %v125_v17 = vpop.f32.mrf.mxu1 }
  0x96   :  { %v126_v18 = vadd.f32 %v125_v17, %v102_v16 }
  0x98   :  { %v132_v19 = vadd.f32 %v181_v15, %v126_v18 }
  0x9a   :  { %v133_v20 = vmax.f32 %v132_v19, 0.0 }
  0x9c   :  { %175 = vmatmul.msk.f32.vlgmr.msra.gmra.mxu2 %vm81_vm0, %v133_v20 }
 0x11f   :  { %v162_v22 = vpop.f32.mrf.mxu2 }
 0x120   :  { %v163_v23 = vadd.f32 %v182_v21, %v162_v22 }
 0x122   :  { %166 = vst.msk [vmem:[%s356_s7] sm:$0xff] %vm165_vm1, %v163_v23 }
 0x123   :  { %171 = vsyncpa [#allocation4], 1 }
 0x124   :  { %172 = vsyncpa [#allocation6], 1 }

</bundles_post_ra>
